<compile_context>
chip_gen: v6e
topology: v6e:2x2x1
jax: 0.10.0
libtpu: 0.0.40
codegen_flags: <defaults>
</compile_context>

<pallas_src>
import functools

import jax
import jax.numpy as jnp
from jax.experimental import pallas as pl
from jax.experimental.pallas import tpu as pltpu

GAMMA = 2.0  # module default; implemented as an explicit square in the kernel.


def focal_loss_kernel(x_ref, t_ref, o_ref, *, n_rows, tile_n):
    # x_ref: [TILE_N, C] logits, t_ref: [TILE_N, 1] int32 targets,
    # o_ref: [1, 1, 128] f32 lane-dense per-tile partial sum.
    x = x_ref[...].astype(jnp.float32)                  # f32 compute (v5e has no bf16 VPU)
    t = t_ref[...]                                      # [TILE_N, 1] int32

    # Row-validity mask: handles the ragged last tile (and any garbage the boundary
    # DMA leaves in the out-of-range rows) without padding the inputs in HBM.
    row = pl.program_id(0) * tile_n + jax.lax.broadcasted_iota(
        jnp.int32, (tile_n, 1), 0)
    row_valid = row < n_rows                             # [TILE_N, 1] bool

    # Numerically stable log-sum-exp over the class axis.  exp(z) over the full
    # tile is the only unavoidable [TILE_N, C] transcendental pass.
    m = jnp.max(x, axis=1, keepdims=True)                # [TILE_N, 1]  XLU reduce
    z = x - m                                            # [TILE_N, C]
    sum_e = jnp.sum(jnp.exp(z), axis=1, keepdims=True)   # [TILE_N, 1]

    # Gather-then-compute: pull out only the target column per row, then do the
    # focal-loss arithmetic on [TILE_N, 1] vectors (no full-tile logpt/pt/mod).
    col = jax.lax.broadcasted_iota(jnp.int32, z.shape, 1)
    z_t = jnp.sum(jnp.where(col == t, z, 0.0), axis=1, keepdims=True)  # [TILE_N, 1]

    logpt_t = z_t - jnp.log(sum_e)                       # [TILE_N, 1]
    pt_t = jnp.exp(logpt_t)                              # exact (no approx recip)
    one_minus = 1.0 - pt_t
    mod_t = one_minus * one_minus * logpt_t              # (1 - pt)**GAMMA, GAMMA==2

    partial = jnp.sum(jnp.where(row_valid, mod_t, 0.0))  # masked rows contribute 0
    o_ref[...] = jnp.full(o_ref.shape, partial, dtype=jnp.float32)


def _round_up(x, m):
    return ((x + m - 1) // m) * m


def _vmem_params():
    # (per-tile working-set budget, scoped vmem_limit_bytes), per TPU generation.
    try:
        cap = pltpu.get_tpu_info().vmem_capacity_bytes
    except Exception:
        cap = 64 * 1024 * 1024
    if cap >= 96 * 1024 * 1024:
        # v5e / v6e: 128 MiB physical VMEM — be generous.
        return 56 * 1024 * 1024, 96 * 1024 * 1024
    # v7x: 64 MiB physical VMEM per TensorCore — stay conservative.
    return 20 * 1024 * 1024, 32 * 1024 * 1024


def _pick_tile_n(n, c, in_itemsize, budget_bytes,
                 target_block_bytes=4 * 1024 * 1024):
    # Rows such that one logits block is ~target_block_bytes (HBM BW sweet spot).
    rows_by_block = max(8, target_block_bytes // max(1, c * in_itemsize))
    # Rows such that the per-tile working set fits the budget:
    #   2x double-buffered logits block + 2x targets block (padded to 128 lanes in
    #   VMEM) + ~5 f32 [TILE_N, C] intermediates in the body.
    bytes_per_row = c * (2 * in_itemsize + 5 * 4) + 2 * 128 * 4
    rows_by_vmem = max(8, budget_bytes // bytes_per_row)
    tile = min(rows_by_block, rows_by_vmem, _round_up(n, 8))
    tile = max(8, (tile // 8) * 8)
    # Keep >= 2 grid tiles when possible so ("parallel",) can shard across v7x's
    # two TensorCores (and the pipeline has something to overlap).
    if tile >= n and n > 8:
        tile = max(8, _round_up(-(-n // 2), 8))
    return tile


def focal_loss(logits, target, tile_n=None):
    """logits: [N, C] float (f32 or bf16), target: [N] int -> scalar f32 loss."""
    n, c = logits.shape
    itemsize = jnp.dtype(logits.dtype).itemsize
    budget_bytes, vmem_limit = _vmem_params()
    if tile_n is None:
        tile_n = _pick_tile_n(n, c, itemsize, budget_bytes)
    else:
        tile_n = max(8, (int(tile_n) // 8) * 8)

    num_tiles = pl.cdiv(n, tile_n)
    t2d = target.astype(jnp.int32).reshape(n, 1)

    kernel = functools.partial(focal_loss_kernel, n_rows=n, tile_n=tile_n)

    partials = pl.pallas_call(
        kernel,
        out_shape=jax.ShapeDtypeStruct((num_tiles, 1, 128), jnp.float32),
        grid=(num_tiles,),
        in_specs=[
            pl.BlockSpec((tile_n, c), lambda i: (i, 0)),
            pl.BlockSpec((tile_n, 1), lambda i: (i, 0)),
        ],
        out_specs=pl.BlockSpec((1, 1, 128), lambda i: (i, 0, 0)),
        compiler_params=pltpu.CompilerParams(
            dimension_semantics=("parallel",),
            vmem_limit_bytes=vmem_limit,
        ),
    )(logits, t2d)

    # nll_loss with weight=None -> mean of -picked values over the true N rows.
    return -jnp.sum(partials[:, 0, 0]) / jnp.float32(n)


def focal_loss_ref(logits, target):
    # Pure-JAX reference for correctness checks.
    x = logits.astype(jnp.float32)
    logpt = jax.nn.log_softmax(x, axis=1)
    pt = jnp.exp(logpt)
    mod = ((1.0 - pt) ** GAMMA) * logpt
    picked = jnp.take_along_axis(mod, target[:, None].astype(jnp.int32), axis=1)[:, 0]
    return -jnp.mean(picked)


if __name__ == "__main__":
    key = jax.random.PRNGKey(0)

    # Case 1: small shapes matching the module's docstring ([N, C] logits, [N] targets).
    k1, k2 = jax.random.split(key)
    N, C = 8, 32
    logits = jax.random.normal(k1, (N, C), dtype=jnp.float32)
    target = jax.random.randint(k2, (N,), 0, C, dtype=jnp.int32)
    loss = jax.block_until_ready(focal_loss(logits, target))
    ref = jax.block_until_ready(focal_loss_ref(logits, target))
    assert jnp.allclose(loss, ref, rtol=1e-4, atol=1e-5), (loss, ref)

    # Case 2: multi-tile grid + ragged last tile (N not a multiple of TILE_N),
    # handled purely in-kernel (no wrapper-side padding of the logits).
    k3, k4 = jax.random.split(k2)
    N2, C2 = 100, 128
    logits2 = jax.random.normal(k3, (N2, C2), dtype=jnp.float32)
    target2 = jax.random.randint(k4, (N2,), 0, C2, dtype=jnp.int32)
    loss2 = jax.block_until_ready(focal_loss(logits2, target2, tile_n=32))
    ref2 = jax.block_until_ready(focal_loss_ref(logits2, target2))
    assert jnp.allclose(loss2, ref2, rtol=1e-4, atol=1e-5), (loss2, ref2)

    # Case 3: bf16 logits (half HBM traffic; f32 compute inside the kernel) with
    # the auto tile picker (also exercises the >=2-tile split for v7x).
    k5, k6 = jax.random.split(k4)
    N3, C3 = 96, 64
    logits3 = jax.random.normal(k5, (N3, C3), dtype=jnp.float32).astype(jnp.bfloat16)
    target3 = jax.random.randint(k6, (N3,), 0, C3, dtype=jnp.int32)
    loss3 = jax.block_until_ready(focal_loss(logits3, target3))
    ref3 = jax.block_until_ready(focal_loss_ref(logits3, target3))
    assert jnp.allclose(loss3, ref3, rtol=1e-4, atol=1e-5), (loss3, ref3)

    print("KERNEL_OK")
</pallas_src>

<mosaic_0001>
module attributes {stable_mosaic.version = 11 : i64} {
  func.func @focal_loss_kernel(%arg0: i32, %arg1: memref<8x32xf32, #tpu.memory_space<vmem>>, %arg2: memref<8x1xi32, #tpu.memory_space<vmem>>, %arg3: memref<1x1x128xf32, #tpu.memory_space<vmem>>) attributes {dimension_semantics = [#tpu.dimension_semantics<parallel>], iteration_bounds = array<i64: 1>, scalar_prefetch = 0 : i64, scratch_operands = 0 : i64, tpu.core_type = #tpu.core_type<tc>, window_params = [{transform_indices = @transform_0, window_bounds = array<i64: 8, 32>}, {transform_indices = @transform_1, window_bounds = array<i64: 8, 1>}, {transform_indices = @transform_2, window_bounds = array<i64: 1, 1, 128>}]} {
    %c0 = arith.constant 0 : index
    %c0_0 = arith.constant 0 : index
    %0 = vector.load %arg1[%c0, %c0_0] : memref<8x32xf32, #tpu.memory_space<vmem>>, vector<8x32xf32>
    %c0_1 = arith.constant 0 : index
    %c0_2 = arith.constant 0 : index
    %1 = vector.load %arg2[%c0_1, %c0_2] : memref<8x1xi32, #tpu.memory_space<vmem>>, vector<8x1xi32>
    %c8_i32 = arith.constant 8 : i32
    %2 = arith.muli %arg0, %c8_i32 : i32
    %3 = tpu.iota {dimensions = array<i32: 0>} : vector<8x1xi32>
    %4 = vector.broadcast %2 : i32 to vector<8x1xi32>
    %5 = arith.addi %4, %3 : vector<8x1xi32>
    %c8_i32_3 = arith.constant 8 : i32
    %6 = vector.broadcast %c8_i32_3 : i32 to vector<8x1xi32>
    %7 = arith.cmpi slt, %5, %6 : vector<8x1xi32>
    %cst = arith.constant dense<0xFF800000> : vector<8xf32>
    %8 = vector.multi_reduction <maximumf>, %0, %cst [1] : vector<8x32xf32> to vector<8xf32>
    %9 = vector.shape_cast %8 : vector<8xf32> to vector<8x1xf32>
    %10 = vector.broadcast %9 : vector<8x1xf32> to vector<8x32xf32>
    %11 = arith.subf %0, %10 : vector<8x32xf32>
    %12 = math.exp %11 : vector<8x32xf32>
    %cst_4 = arith.constant dense<0.000000e+00> : vector<8xf32>
    %13 = vector.multi_reduction <add>, %12, %cst_4 [1] : vector<8x32xf32> to vector<8xf32>
    %14 = vector.shape_cast %13 : vector<8xf32> to vector<8x1xf32>
    %15 = tpu.iota {dimensions = array<i32: 1>} : vector<8x32xi32>
    %16 = vector.broadcast %1 : vector<8x1xi32> to vector<8x32xi32>
    %17 = arith.cmpi eq, %15, %16 : vector<8x32xi32>
    %cst_5 = arith.constant 0.000000e+00 : f32
    %18 = vector.broadcast %cst_5 : f32 to vector<8x32xf32>
    %19 = arith.select %17, %11, %18 : vector<8x32xi1>, vector<8x32xf32>
    %cst_6 = arith.constant dense<0.000000e+00> : vector<8xf32>
    %20 = vector.multi_reduction <add>, %19, %cst_6 [1] : vector<8x32xf32> to vector<8xf32>
    %21 = vector.shape_cast %20 : vector<8xf32> to vector<8x1xf32>
    %22 = math.log %14 : vector<8x1xf32>
    %23 = arith.subf %21, %22 : vector<8x1xf32>
    %24 = math.exp %23 : vector<8x1xf32>
    %cst_7 = arith.constant 1.000000e+00 : f32
    %25 = vector.broadcast %cst_7 : f32 to vector<8x1xf32>
    %26 = arith.subf %25, %24 : vector<8x1xf32>
    %27 = arith.mulf %26, %26 : vector<8x1xf32>
    %28 = arith.mulf %27, %23 : vector<8x1xf32>
    %cst_8 = arith.constant 0.000000e+00 : f32
    %29 = vector.broadcast %cst_8 : f32 to vector<8x1xf32>
    %30 = arith.select %7, %28, %29 : vector<8x1xi1>, vector<8x1xf32>
    %31 = vector.shape_cast %30 : vector<8x1xf32> to vector<1x8x1xf32>
    %cst_9 = arith.constant dense<0.000000e+00> : vector<1xf32>
    %32 = vector.multi_reduction <add>, %31, %cst_9 [1, 2] : vector<1x8x1xf32> to vector<1xf32>
    %33 = vector.shape_cast %32 : vector<1xf32> to vector<1x1x1xf32>
    %34 = vector.extract %33[0, 0, 0] : f32 from vector<1x1x1xf32>
    %35 = vector.broadcast %34 : f32 to vector<1x1x128xf32>
    %c0_10 = arith.constant 0 : index
    %c0_11 = arith.constant 0 : index
    %c0_12 = arith.constant 0 : index
    %36 = vector.load %arg3[%c0_10, %c0_11, %c0_12] : memref<1x1x128xf32, #tpu.memory_space<vmem>>, vector<1x1x128xf32>
    tpu.vector_store %arg3[%c0_10, %c0_11, %c0_12], %35 {strides = array<i32>} : memref<1x1x128xf32, #tpu.memory_space<vmem>>, vector<1x1x128xf32>,
    return
  }
  func.func @transform_0(%arg0: i32) -> (i32, i32) {
    %c0_i32 = arith.constant 0 : i32
    %c0_i32_0 = arith.constant 0 : i32
    return %arg0, %c0_i32 : i32, i32
  }
  func.func @transform_1(%arg0: i32) -> (i32, i32) {
    %c0_i32 = arith.constant 0 : i32
    %c0_i32_0 = arith.constant 0 : i32
    return %arg0, %c0_i32 : i32, i32
  }
  func.func @transform_2(%arg0: i32) -> (i32, i32, i32) {
    %c0_i32 = arith.constant 0 : i32
    %c0_i32_0 = arith.constant 0 : i32
    %c0_i32_1 = arith.constant 0 : i32
    return %arg0, %c0_i32, %c0_i32_0 : i32, i32, i32
  }
}

</mosaic_0001>

<bundles_post_ra>
// kernel: tpu_custom_call.1
= control target key start
LH: loop header
LB: loop body
LE: loop exit
PB: predicated region body
PF: predicated region fallthrough
CT: control target
= control target key end

     0   :  { %vm20_vm0 = vcmask 261120   ;;  %s138_s0 = inlined_call_operand.vmem [shape: f32[8,32], index: 0, kind: input, shape index: {}]   ;;  %s139_s1 = inlined_call_operand.vmem [shape: s32[8,1], index: 1, kind: input, shape index: {}]   ;;  %s140_s2 = inlined_call_operand.hbm [shape: f32[1,1,128], index: 2, kind: output, shape index: {}]  }
   0x1   :  { %v12_v0 = vld [vmem:[%s138_s0] sm:$0xff] }
   0x2   :  { %7 = vsyncpa [#allocation3], 0  ;;  %v21_v1 = vsel %vm20_vm0, %v12_v0, -inf  ;;  %v109_v2 = vmov 0   ;;  %v13_v3 = vld [vmem:[%s139_s1] sm:$0xff]  ;;  %v30_v7 = vlaneseq  ;;  %vm49_vm2 = vcmask 7168  }
   0x3   :  { %80 = vset.pattern.permute.xlu0 %v109_v2  ;;  %s110_s0 = smov [#allocation2]  }
   0x4   :  { %22 = vmax.xlane.f32.xlu0 %v21_v1  ;;  %v31_v8 = vand.u32 127, %v30_v7  ;;  %s68_s1 = sshll.u32 %s110_s0, 4  ;;  %s69_s1 = int_to_ptr.vmem [resolvable:$true] %s68_s1 }
   0x5   :  { %s87_s14 = scalar_lea.vmem %s69_s1, 16  ;;  %s91_s15 = scalar_lea.vmem %s69_s1, 32 }
   0x6   :  { %p88_p0 = scmp.ne.s32.totalorder %s69_s1, %s87_s14  ;;  %p92_p1 = scmp.lt.s32.totalorder %s69_s1, %s69_s1 }
   0x7   :  { %p93_p2 = scmp.lt.s32.totalorder %s91_s15, %s87_s14 }
   0x9   :  { %p94_p3 = por %p93_p2, %p92_p1 }
   0xb   :  { %p95_p4 = pnand %p94_p3, %p88_p0 }
  0x1a   :  { %33 = vperm.xlu0 %80, %v13_v3  }
  0x8d   :  { %v23_v4 = vpop.xlane.xlu0 %22 }
  0x8e   :  { %v24_v5 = vsub.f32 %v12_v0, %v23_v4 }
  0x90   :  { %v25_v6 = vmul.f32 1.442695, %v24_v5 }
  0x92   :  { %81 = vpow2.f32 %v25_v6 }
  0x95   :  { %v34_v9 = vpop.permute.xlu0 %33 }
  0x96   :  { %vm35_vm1 = vcmp.eq.s32.totalorder %v31_v8, %v34_v9 }
  0x97   :  { %v36_v12 = vsel %vm35_vm1, %v24_v5, 0.0 }
  0x98   :  { %v37_v13 = vsel %vm20_vm0, %v36_v12, 0.0 }
  0x9f   :  { %v82_v10 = vpop.eup %81 }
  0xa0   :  { %v27_v11 = vsel %vm20_vm0, %v82_v10, 0.0 }
  0xa1   :  { %28 = vadd.xlane.f32.xlu1 %v27_v11 }
  0xa5   :  { %38 = vadd.xlane.f32.xlu1 %v37_v13 }
 0x12a   :  { %v29_v14 = vpop.xlane.xlu1 %28 }
 0x12b   :  { %83 = vlog2.f32 %v29_v14 }
 0x12e   :  { %v39_v17 = vpop.xlane.xlu1 %38 }
 0x138   :  { %v84_v15 = vpop.eup %83 }
 0x139   :  { %v41_v16 = vmul.f32 0.6931472, %v84_v15 }
 0x13b   :  { %v42_v18 = vsub.f32 %v39_v17, %v41_v16 }
 0x13d   :  { %v43_v19 = vmul.f32 1.442695, %v42_v18 }
 0x13f   :  { %85 = vpow2.f32 %v43_v19 }
 0x14c   :  { %v86_v20 = vpop.eup %85 }
 0x14d   :  { %v45_v21 = vsub.f32 1.0, %v86_v20 }
 0x14f   :  { %v46_v22 = vmul.f32 %v45_v21, %v45_v21 }
 0x151   :  { %v47_v23 = vmul.f32 %v46_v22, %v42_v18 }
 0x153   :  { %v50_v24 = vsel %vm49_vm2, %v47_v23, 0.0 }
 0x154   :  { %51 = vadd.xlane.f32.xlu1 %v50_v24 }
 0x1dd   :  { %v52_v25 = vpop.xlane.xlu1 %51 }
 0x1de   :  { %v53_v26 = vrot.slane %v52_v25, 4 }
 0x1e0   :  { %v54_v27 = vadd.f32 %v53_v26, %v52_v25 }
 0x1e2   :  { %v55_v28 = vrot.slane %v54_v27, 2 }
 0x1e4   :  { %v56_v29 = vadd.f32 %v55_v28, %v54_v27 }
 0x1e6   :  { %v57_v30 = vrot.slane %v56_v29, 1 }
 0x1e8   :  { %v58_v31 = vadd.f32 %v57_v30, %v56_v29 }
 0x1ea   :  { %76 = vpush %v58_v31 }
 0x21b   :  { %s77_s13 = spop %76 }
 0x21c   :  { %v60_v32 = vstv %s77_s13 }
 0x21d   :  { %61 = vst [vmem:[#allocation2] sm:$0x1] %v60_v32 }
 0x21e   :  { %98 = shalt.err (!%p95_p4)
}
 0x21f   :  { %71 = dma.vmem_to_hbm [thread:$0]  %s69_s1, 16, %s140_s2, [#allocation3]  }
 0x220   :  { %107 = dma.done.wait [#allocation3], 16  }
 0x221   :  { %108 = vsyncadd [#allocation3], 4294967280 }
 0x222   :  { %75 = vsyncpa [#allocation3], 1 }

</bundles_post_ra>
